<compile_context>
chip_gen: v6e
topology: v6e:2x2x1
jax: 0.10.0
libtpu: 0.0.40
codegen_flags: <defaults>
</compile_context>

<pallas_src>
import functools

import jax
import jax.numpy as jnp
from jax.experimental import pallas as pl
from jax.experimental.pallas import tpu as pltpu


def _round_up(x, m):
    return ((x + m - 1) // m) * m


def mlp_decoder_kernel(x_ref,
                       w1_ref, b1_ref,
                       w2_ref, b2_ref,
                       w3_ref, b3_ref,
                       w4_ref, b4_ref,
                       w5_ref, b5_ref,
                       o_ref):
    """Fused 5-layer MLP, one batch tile per grid step.

    x_ref:   (tile_b, in_features)  bf16
    wN_ref:  (in_dim, out_dim)      bf16   (== PyTorch weight transposed)
    bN_ref:  (1, out_dim)           f32
    o_ref:   (tile_b, out_pad)      f32
    """

    def hidden(h_bf16, w_ref, b_ref):
        # bf16 x bf16 -> f32 accumulate on the MXU; bias/ReLU in f32 on the VPU.
        y = jnp.dot(h_bf16, w_ref[...], preferred_element_type=jnp.float32)
        y = jnp.maximum(y + b_ref[...], 0.0)
        return y.astype(jnp.bfloat16)

    h = x_ref[...]
    h = hidden(h, w1_ref, b1_ref)
    h = hidden(h, w2_ref, b2_ref)
    h = hidden(h, w3_ref, b3_ref)
    h = hidden(h, w4_ref, b4_ref)
    y = jnp.dot(h, w5_ref[...], preferred_element_type=jnp.float32) + b5_ref[...]
    o_ref[...] = y.astype(o_ref.dtype)


@functools.partial(jax.jit, static_argnames=("tile_b",))
def mlp_decoder(x, params, *, tile_b=128):
    """x: (B, in_features) f32.  params: w1..w5 stored as (in, out), b1..b5 as (1, out)."""
    B, in_features = x.shape
    out_features = params["w5"].shape[1]

    # ---- lane-pad the final layer to a multiple of 128 (lane-dense output stores).
    out_pad = max(128, _round_up(out_features, 128))
    pad_cols = out_pad - out_features
    w5 = params["w5"]
    b5 = params["b5"]
    if pad_cols:
        w5 = jnp.pad(w5, ((0, 0), (0, pad_cols)))
        b5 = jnp.pad(b5, ((0, 0), (0, pad_cols)))

    # ---- batch tiling: at most 128 rows per tile; pad batch so it divides evenly.
    tile_b = min(tile_b, _round_up(B, 8))
    b_pad = _round_up(B, tile_b)

    x_bf16 = x.astype(jnp.bfloat16)
    if b_pad != B:
        x_bf16 = jnp.pad(x_bf16, ((0, b_pad - B), (0, 0)))

    # bf16 matmul operands; biases stay f32 for the f32 bias-add/ReLU path.
    ws = [params["w1"].astype(jnp.bfloat16),
          params["w2"].astype(jnp.bfloat16),
          params["w3"].astype(jnp.bfloat16),
          params["w4"].astype(jnp.bfloat16),
          w5.astype(jnp.bfloat16)]
    bs = [params["b1"].astype(jnp.float32),
          params["b2"].astype(jnp.float32),
          params["b3"].astype(jnp.float32),
          params["b4"].astype(jnp.float32),
          b5.astype(jnp.float32)]

    grid = (b_pad // tile_b,)

    def full_spec(shape):
        # Whole array resident in VMEM; constant block index across the grid.
        return pl.BlockSpec(shape, lambda i: (0, 0))

    in_specs = [pl.BlockSpec((tile_b, in_features), lambda i: (i, 0))]
    for w, b in zip(ws, bs):
        in_specs.append(full_spec(w.shape))
        in_specs.append(full_spec(b.shape))

    out_spec = pl.BlockSpec((tile_b, out_pad), lambda i: (i, 0))

    out_padded = pl.pallas_call(
        mlp_decoder_kernel,
        out_shape=jax.ShapeDtypeStruct((b_pad, out_pad), jnp.float32),
        grid_spec=pltpu.PrefetchScalarGridSpec(
            num_scalar_prefetch=0,
            grid=grid,
            in_specs=in_specs,
            out_specs=out_spec,
        ),
        compiler_params=pltpu.CompilerParams(
            dimension_semantics=("parallel",),
        ),
    )(x_bf16,
      ws[0], bs[0], ws[1], bs[1], ws[2], bs[2], ws[3], bs[3], ws[4], bs[4])

    return out_padded[:B, :out_features]


def init_params(key, in_features, out_features):
    """Deterministic init matching nn.Linear shapes (stored transposed: (in, out))."""
    dims = [(in_features, 128), (128, 256), (256, 256), (256, 256), (256, out_features)]
    params = {}
    for idx, (din, dout) in enumerate(dims, start=1):
        key, kw, kb = jax.random.split(key, 3)
        bound = 1.0 / jnp.sqrt(din)  # PyTorch default uniform(-1/sqrt(fan_in), +1/sqrt(fan_in))
        params[f"w{idx}"] = jax.random.uniform(
            kw, (din, dout), dtype=jnp.float32, minval=-bound, maxval=bound)
        params[f"b{idx}"] = jax.random.uniform(
            kb, (1, dout), dtype=jnp.float32, minval=-bound, maxval=bound)
    return params


def mlp_decoder_ref(x, params):
    """JAX reference using the same precision recipe (bf16 operands, f32 accumulate)."""
    h = x.astype(jnp.bfloat16)
    for idx in range(1, 5):
        w = params[f"w{idx}"].astype(jnp.bfloat16)
        y = jnp.dot(h, w, preferred_element_type=jnp.float32) + params[f"b{idx}"]
        h = jnp.maximum(y, 0.0).astype(jnp.bfloat16)
    w5 = params["w5"].astype(jnp.bfloat16)
    return jnp.dot(h, w5, preferred_element_type=jnp.float32) + params["b5"]


if __name__ == "__main__":
    key = jax.random.PRNGKey(0)
    batch, in_features, out_features = 16, 32, 24

    key, kx = jax.random.split(key)
    x = jax.random.normal(kx, (batch, in_features), dtype=jnp.float32)
    params = init_params(key, in_features, out_features)

    out = mlp_decoder(x, params)
    out = jax.block_until_ready(out)

    ref = mlp_decoder_ref(x, params)
    assert out.shape == (batch, out_features)
    assert jnp.allclose(out, ref, atol=1e-2, rtol=1e-2), "mismatch vs JAX reference"

    # sanity vs full-f32 math (looser tolerance, bf16 operands)
    ref_f32 = x
    for idx in range(1, 5):
        ref_f32 = jnp.maximum(ref_f32 @ params[f"w{idx}"] + params[f"b{idx}"], 0.0)
    ref_f32 = ref_f32 @ params["w5"] + params["b5"]
    assert jnp.max(jnp.abs(out - ref_f32)) < 0.1, "bf16 path drifted too far from f32 math"

    print("KERNEL_OK")
</pallas_src>

<mosaic_0001>
module attributes {stable_mosaic.version = 11 : i64} {
  func.func @mlp_decoder_kernel(%arg0: i32, %arg1: memref<16x32xbf16, #tpu.memory_space<vmem>>, %arg2: memref<32x128xbf16, #tpu.memory_space<vmem>>, %arg3: memref<1x128xf32, #tpu.memory_space<vmem>>, %arg4: memref<128x256xbf16, #tpu.memory_space<vmem>>, %arg5: memref<1x256xf32, #tpu.memory_space<vmem>>, %arg6: memref<256x256xbf16, #tpu.memory_space<vmem>>, %arg7: memref<1x256xf32, #tpu.memory_space<vmem>>, %arg8: memref<256x256xbf16, #tpu.memory_space<vmem>>, %arg9: memref<1x256xf32, #tpu.memory_space<vmem>>, %arg10: memref<256x128xbf16, #tpu.memory_space<vmem>>, %arg11: memref<1x128xf32, #tpu.memory_space<vmem>>, %arg12: memref<16x128xf32, #tpu.memory_space<vmem>>) attributes {dimension_semantics = [#tpu.dimension_semantics<parallel>], iteration_bounds = array<i64: 1>, scalar_prefetch = 0 : i64, scratch_operands = 0 : i64, tpu.core_type = #tpu.core_type<tc>, window_params = [{transform_indices = @transform_0, window_bounds = array<i64: 16, 32>}, {pipeline_mode = #tpu.pipeline_mode<synchronous>, transform_indices = @transform_1, window_bounds = array<i64: 32, 128>}, {pipeline_mode = #tpu.pipeline_mode<synchronous>, transform_indices = @transform_2, window_bounds = array<i64: 1, 128>}, {pipeline_mode = #tpu.pipeline_mode<synchronous>, transform_indices = @transform_3, window_bounds = array<i64: 128, 256>}, {pipeline_mode = #tpu.pipeline_mode<synchronous>, transform_indices = @transform_4, window_bounds = array<i64: 1, 256>}, {pipeline_mode = #tpu.pipeline_mode<synchronous>, transform_indices = @transform_5, window_bounds = array<i64: 256, 256>}, {pipeline_mode = #tpu.pipeline_mode<synchronous>, transform_indices = @transform_6, window_bounds = array<i64: 1, 256>}, {pipeline_mode = #tpu.pipeline_mode<synchronous>, transform_indices = @transform_7, window_bounds = array<i64: 256, 256>}, {pipeline_mode = #tpu.pipeline_mode<synchronous>, transform_indices = @transform_8, window_bounds = array<i64: 1, 256>}, {pipeline_mode = #tpu.pipeline_mode<synchronous>, transform_indices = @transform_9, window_bounds = array<i64: 256, 128>}, {pipeline_mode = #tpu.pipeline_mode<synchronous>, transform_indices = @transform_10, window_bounds = array<i64: 1, 128>}, {transform_indices = @transform_11, window_bounds = array<i64: 16, 128>}]} {
    %c0 = arith.constant 0 : index
    %c0_0 = arith.constant 0 : index
    %0 = vector.load %arg1[%c0, %c0_0] : memref<16x32xbf16, #tpu.memory_space<vmem>>, vector<16x32xbf16>
    %c0_1 = arith.constant 0 : index
    %c0_2 = arith.constant 0 : index
    %1 = vector.load %arg2[%c0_1, %c0_2] : memref<32x128xbf16, #tpu.memory_space<vmem>>, vector<32x128xbf16>
    %cst = arith.constant dense<0.000000e+00> : vector<16x128xf32>
    %2 = tpu.matmul %0, %1, %cst {dimension_numbers = #tpu.dot_dimension_numbers<[1], [0], [0], [1], [0, 0, 1, 1], [], []>} : vector<16x32xbf16>, vector<32x128xbf16>, vector<16x128xf32> -> vector<16x128xf32>
    %c0_3 = arith.constant 0 : index
    %c0_4 = arith.constant 0 : index
    %3 = vector.load %arg3[%c0_3, %c0_4] : memref<1x128xf32, #tpu.memory_space<vmem>>, vector<1x128xf32>
    %4 = vector.broadcast %3 : vector<1x128xf32> to vector<16x128xf32>
    %5 = arith.addf %2, %4 : vector<16x128xf32>
    %cst_5 = arith.constant 0.000000e+00 : f32
    %6 = vector.broadcast %cst_5 : f32 to vector<16x128xf32>
    %7 = arith.maximumf %5, %6 : vector<16x128xf32>
    %8 = arith.truncf %7 : vector<16x128xf32> to vector<16x128xbf16>
    %c0_6 = arith.constant 0 : index
    %c0_7 = arith.constant 0 : index
    %9 = vector.load %arg4[%c0_6, %c0_7] : memref<128x256xbf16, #tpu.memory_space<vmem>>, vector<128x256xbf16>
    %cst_8 = arith.constant dense<0.000000e+00> : vector<16x256xf32>
    %10 = tpu.matmul %8, %9, %cst_8 {dimension_numbers = #tpu.dot_dimension_numbers<[1], [0], [0], [1], [0, 0, 1, 1], [], []>} : vector<16x128xbf16>, vector<128x256xbf16>, vector<16x256xf32> -> vector<16x256xf32>
    %c0_9 = arith.constant 0 : index
    %c0_10 = arith.constant 0 : index
    %11 = vector.load %arg5[%c0_9, %c0_10] : memref<1x256xf32, #tpu.memory_space<vmem>>, vector<1x256xf32>
    %12 = vector.broadcast %11 : vector<1x256xf32> to vector<16x256xf32>
    %13 = arith.addf %10, %12 : vector<16x256xf32>
    %cst_11 = arith.constant 0.000000e+00 : f32
    %14 = vector.broadcast %cst_11 : f32 to vector<16x256xf32>
    %15 = arith.maximumf %13, %14 : vector<16x256xf32>
    %16 = arith.truncf %15 : vector<16x256xf32> to vector<16x256xbf16>
    %c0_12 = arith.constant 0 : index
    %c0_13 = arith.constant 0 : index
    %17 = vector.load %arg6[%c0_12, %c0_13] : memref<256x256xbf16, #tpu.memory_space<vmem>>, vector<256x256xbf16>
    %cst_14 = arith.constant dense<0.000000e+00> : vector<16x256xf32>
    %18 = tpu.matmul %16, %17, %cst_14 {dimension_numbers = #tpu.dot_dimension_numbers<[1], [0], [0], [1], [0, 0, 1, 1], [], []>} : vector<16x256xbf16>, vector<256x256xbf16>, vector<16x256xf32> -> vector<16x256xf32>
    %c0_15 = arith.constant 0 : index
    %c0_16 = arith.constant 0 : index
    %19 = vector.load %arg7[%c0_15, %c0_16] : memref<1x256xf32, #tpu.memory_space<vmem>>, vector<1x256xf32>
    %20 = vector.broadcast %19 : vector<1x256xf32> to vector<16x256xf32>
    %21 = arith.addf %18, %20 : vector<16x256xf32>
    %cst_17 = arith.constant 0.000000e+00 : f32
    %22 = vector.broadcast %cst_17 : f32 to vector<16x256xf32>
    %23 = arith.maximumf %21, %22 : vector<16x256xf32>
    %24 = arith.truncf %23 : vector<16x256xf32> to vector<16x256xbf16>
    %c0_18 = arith.constant 0 : index
    %c0_19 = arith.constant 0 : index
    %25 = vector.load %arg8[%c0_18, %c0_19] : memref<256x256xbf16, #tpu.memory_space<vmem>>, vector<256x256xbf16>
    %cst_20 = arith.constant dense<0.000000e+00> : vector<16x256xf32>
    %26 = tpu.matmul %24, %25, %cst_20 {dimension_numbers = #tpu.dot_dimension_numbers<[1], [0], [0], [1], [0, 0, 1, 1], [], []>} : vector<16x256xbf16>, vector<256x256xbf16>, vector<16x256xf32> -> vector<16x256xf32>
    %c0_21 = arith.constant 0 : index
    %c0_22 = arith.constant 0 : index
    %27 = vector.load %arg9[%c0_21, %c0_22] : memref<1x256xf32, #tpu.memory_space<vmem>>, vector<1x256xf32>
    %28 = vector.broadcast %27 : vector<1x256xf32> to vector<16x256xf32>
    %29 = arith.addf %26, %28 : vector<16x256xf32>
    %cst_23 = arith.constant 0.000000e+00 : f32
    %30 = vector.broadcast %cst_23 : f32 to vector<16x256xf32>
    %31 = arith.maximumf %29, %30 : vector<16x256xf32>
    %32 = arith.truncf %31 : vector<16x256xf32> to vector<16x256xbf16>
    %c0_24 = arith.constant 0 : index
    %c0_25 = arith.constant 0 : index
    %33 = vector.load %arg10[%c0_24, %c0_25] : memref<256x128xbf16, #tpu.memory_space<vmem>>, vector<256x128xbf16>
    %cst_26 = arith.constant dense<0.000000e+00> : vector<16x128xf32>
    %34 = tpu.matmul %32, %33, %cst_26 {dimension_numbers = #tpu.dot_dimension_numbers<[1], [0], [0], [1], [0, 0, 1, 1], [], []>} : vector<16x256xbf16>, vector<256x128xbf16>, vector<16x128xf32> -> vector<16x128xf32>
    %c0_27 = arith.constant 0 : index
    %c0_28 = arith.constant 0 : index
    %35 = vector.load %arg11[%c0_27, %c0_28] : memref<1x128xf32, #tpu.memory_space<vmem>>, vector<1x128xf32>
    %36 = vector.broadcast %35 : vector<1x128xf32> to vector<16x128xf32>
    %37 = arith.addf %34, %36 : vector<16x128xf32>
    %c0_29 = arith.constant 0 : index
    %c0_30 = arith.constant 0 : index
    %38 = vector.load %arg12[%c0_29, %c0_30] : memref<16x128xf32, #tpu.memory_space<vmem>>, vector<16x128xf32>
    tpu.vector_store %arg12[%c0_29, %c0_30], %37 {strides = array<i32>} : memref<16x128xf32, #tpu.memory_space<vmem>>, vector<16x128xf32>,
    return
  }
  func.func @transform_0(%arg0: i32) -> (i32, i32) {
    %c0_i32 = arith.constant 0 : i32
    %c0_i32_0 = arith.constant 0 : i32
    return %arg0, %c0_i32 : i32, i32
  }
  func.func @transform_1(%arg0: i32) -> (i32, i32) {
    %c0_i32 = arith.constant 0 : i32
    %c0_i32_0 = arith.constant 0 : i32
    %c0_i32_1 = arith.constant 0 : i32
    return %c0_i32, %c0_i32_0 : i32, i32
  }
  func.func @transform_2(%arg0: i32) -> (i32, i32) {
    %c0_i32 = arith.constant 0 : i32
    %c0_i32_0 = arith.constant 0 : i32
    %c0_i32_1 = arith.constant 0 : i32
    return %c0_i32, %c0_i32_0 : i32, i32
  }
  func.func @transform_3(%arg0: i32) -> (i32, i32) {
    %c0_i32 = arith.constant 0 : i32
    %c0_i32_0 = arith.constant 0 : i32
    %c0_i32_1 = arith.constant 0 : i32
    return %c0_i32, %c0_i32_0 : i32, i32
  }
  func.func @transform_4(%arg0: i32) -> (i32, i32) {
    %c0_i32 = arith.constant 0 : i32
    %c0_i32_0 = arith.constant 0 : i32
    %c0_i32_1 = arith.constant 0 : i32
    return %c0_i32, %c0_i32_0 : i32, i32
  }
  func.func @transform_5(%arg0: i32) -> (i32, i32) {
    %c0_i32 = arith.constant 0 : i32
    %c0_i32_0 = arith.constant 0 : i32
    %c0_i32_1 = arith.constant 0 : i32
    return %c0_i32, %c0_i32_0 : i32, i32
  }
  func.func @transform_6(%arg0: i32) -> (i32, i32) {
    %c0_i32 = arith.constant 0 : i32
    %c0_i32_0 = arith.constant 0 : i32
    %c0_i32_1 = arith.constant 0 : i32
    return %c0_i32, %c0_i32_0 : i32, i32
  }
  func.func @transform_7(%arg0: i32) -> (i32, i32) {
    %c0_i32 = arith.constant 0 : i32
    %c0_i32_0 = arith.constant 0 : i32
    %c0_i32_1 = arith.constant 0 : i32
    return %c0_i32, %c0_i32_0 : i32, i32
  }
  func.func @transform_8(%arg0: i32) -> (i32, i32) {
    %c0_i32 = arith.constant 0 : i32
    %c0_i32_0 = arith.constant 0 : i32
    %c0_i32_1 = arith.constant 0 : i32
    return %c0_i32, %c0_i32_0 : i32, i32
  }
  func.func @transform_9(%arg0: i32) -> (i32, i32) {
    %c0_i32 = arith.constant 0 : i32
    %c0_i32_0 = arith.constant 0 : i32
    %c0_i32_1 = arith.constant 0 : i32
    return %c0_i32, %c0_i32_0 : i32, i32
  }
  func.func @transform_10(%arg0: i32) -> (i32, i32) {
    %c0_i32 = arith.constant 0 : i32
    %c0_i32_0 = arith.constant 0 : i32
    %c0_i32_1 = arith.constant 0 : i32
    return %c0_i32, %c0_i32_0 : i32, i32
  }
  func.func @transform_11(%arg0: i32) -> (i32, i32) {
    %c0_i32 = arith.constant 0 : i32
    %c0_i32_0 = arith.constant 0 : i32
    return %arg0, %c0_i32 : i32, i32
  }
}

</mosaic_0001>

<bundles_post_ra>
// kernel: mlp_decoder.1
= control target key start
LH: loop header
LB: loop body
LE: loop exit
PB: predicated region body
PF: predicated region fallthrough
CT: control target
= control target key end

     0   :  { %v1277_v1 = vmov 0.0   ;;  %vm1278_vm0 = vmmov 0   ;;  %vm70_vm1 = vcmask 261120   ;;  %s1668_s0 = inlined_call_operand.vmem [shape: bf16[16,32], index: 0, kind: input, shape index: {}]   ;;  %s1669_s1 = inlined_call_operand.vmem [shape: bf16[32,128], index: 1, kind: input, shape index: {}]   ;;  %s1670_s2 = inlined_call_operand.vmem [shape: f32[1,128], index: 2, kind: input, shape index: {}]   ;;  %s1671_s3 = inlined_call_operand.vmem [shape: bf16[128,256], index: 3, kind: input, shape index: {}]   ;;  %s1672_s4 = inlined_call_operand.vmem [shape: f32[1,256], index: 4, kind: input, shape index: {}]   ;;  %s1673_s5 = inlined_call_operand.vmem [shape: bf16[256,256], index: 5, kind: input, shape index: {}]   ;;  %s1674_s6 = inlined_call_operand.vmem [shape: f32[1,256], index: 6, kind: input, shape index: {}]   ;;  %s1675_s7 = inlined_call_operand.vmem [shape: bf16[256,256], index: 7, kind: input, shape index: {}]   ;;  %s1676_s8 = inlined_call_operand.vmem [shape: f32[1,256], index: 8, kind: input, shape index: {}]   ;;  %s1677_s9 = inlined_call_operand.vmem [shape: bf16[256,128], index: 9, kind: input, shape index: {}]   ;;  %s1678_s10 = inlined_call_operand.vmem [shape: f32[1,128], index: 10, kind: input, shape index: {}]   ;;  %s1679_s11 = inlined_call_operand.hbm [shape: f32[16,128], index: 11, kind: output, shape index: {}]  }
   0x1   :  { %v1116_v0 = vld [vmem:[%s1669_s1 + $0x8] sm:$0xff]   ;;  %1102 = vmatprep.subr.bf16.mxu0 %v1277_v1  ;;  %v1117_v2 = vld [vmem:[%s1669_s1] sm:$0xff]   ;;  %1106 = vmatprep.mubr.msk.bf16.mxu0 %vm1278_vm0, %v1277_v1  ;;  %v1119_v3 = vld [vmem:[%s1671_s3 + $0x74] ss:$8 sps:$4 sm:$0xff]  }
   0x2   :  { %1103 = vmatpush3.bf16.msra.mxu0 %v1116_v0  ;;  %v1121_v4 = vld [vmem:[%s1671_s3 + $0x70] ss:$8 sps:$4 sm:$0xff]   ;;  %v1118_v5 = vld [vmem:[%s1668_s0] sm:$0xff]   ;;  %226 = vmatprep.subr.bf16.mxu1 %v1119_v3  ;;  %v1125_v8 = vld [vmem:[%s1671_s3 + $0x54] ss:$8 sps:$4 sm:$0xff]  }
   0x3   :  { %1104 = vmatprep.subr.bf16.mxu0 %v1277_v1  ;;  %v1122_v6 = vld [vmem:[%s1671_s3 + $0x64] ss:$8 sps:$4 sm:$0xff]   ;;  %227 = vmatpush1.bf16.msra.mxu1 %v1121_v4  ;;  %v1124_v7 = vld [vmem:[%s1671_s3 + $0x60] ss:$8 sps:$4 sm:$0xff]   ;;  %v1127_v9 = vld [vmem:[%s1671_s3 + $0x50] ss:$8 sps:$4 sm:$0xff]  }
   0x4   :  { %228 = vmatprep.subr.bf16.mxu1 %v1122_v6  ;;  %v1128_v10 = vld [vmem:[%s1671_s3 + $0x44] ss:$8 sps:$4 sm:$0xff]   ;;  %v1130_v11 = vld [vmem:[%s1671_s3 + $0x40] ss:$8 sps:$4 sm:$0xff]   ;;  %v1131_v12 = vld [vmem:[%s1671_s3 + $0x34] ss:$8 sps:$4 sm:$0xff]  }
   0x5   :  { %v1133_v13 = vld [vmem:[%s1671_s3 + $0x30] ss:$8 sps:$4 sm:$0xff]   ;;  %v1134_v14 = vld [vmem:[%s1671_s3 + $0x24] ss:$8 sps:$4 sm:$0xff]  }
   0x6   :  { %1105 = vmatpush3.bf16.msra.mxu0 %v1117_v2 }
   0x7   :  { %229 = vmatpush1.bf16.msra.mxu1 %v1124_v7 }
   0x8   :  { %230 = vmatprep.subr.bf16.mxu1 %v1125_v8 }
   0x9   :  { %1107 = vmatmul.mubr.msk.bf16.vlgmr.msra.gmra.mxu0 %vm70_vm1, %v1118_v5 }
   0xb   :  { %231 = vmatpush1.bf16.msra.mxu1 %v1127_v9 }
   0xc   :  { %232 = vmatprep.subr.bf16.mxu1 %v1128_v10 }
   0xf   :  { %233 = vmatpush1.bf16.msra.mxu1 %v1130_v11 }
  0x10   :  { %234 = vmatprep.subr.bf16.mxu1 %v1131_v12 }
  0x13   :  { %235 = vmatpush1.bf16.msra.mxu1 %v1133_v13 }
  0x14   :  { %236 = vmatprep.subr.bf16.mxu1 %v1134_v14 }
  0x15   :  { %16 = vsyncpa [#allocation3], 0  ;;  %v1136_v15 = vld [vmem:[%s1671_s3 + $0x20] ss:$8 sps:$4 sm:$0xff]   ;;  %v1137_v16 = vld [vmem:[%s1671_s3 + $0x14] ss:$8 sps:$4 sm:$0xff]  }
  0x16   :  { %v1139_v17 = vld [vmem:[%s1671_s3 + $0x10] ss:$8 sps:$4 sm:$0xff]   ;;  %v1140_v18 = vld [vmem:[%s1671_s3 + $0x4] ss:$8 sps:$4 sm:$0xff]   ;;  %v1142_v19 = vld [vmem:[%s1671_s3] ss:$8 sps:$4 sm:$0xff]  }
  0x17   :  { %237 = vmatpush1.bf16.msra.mxu1 %v1136_v15  ;;  %v1279_v20 = vmov 0   ;;  %v1143_v21 = vld [vmem:[%s1673_s5 + $0x70] ss:$8 sps:$4 sm:$0xff]   ;;  %v1145_v22 = vld [vmem:[%s1673_s5 + $0x74] ss:$8 sps:$4 sm:$0xff]   ;;  %s1280_s13 = smov [#allocation2]  }
  0x18   :  { %238 = vmatprep.subr.bf16.mxu1 %v1137_v16  ;;  %258 = vmatprep.mubr.bf16.mxu1 %v1279_v20  ;;  %v1148_v23 = vld [vmem:[%s1673_s5 + $0x64] ss:$8 sps:$4 sm:$0xff]   ;;  %v1146_v24 = vld [vmem:[%s1673_s5 + $0x60] ss:$8 sps:$4 sm:$0xff]   ;;  %v1151_v25 = vld [vmem:[%s1673_s5 + $0x54] ss:$8 sps:$4 sm:$0xff]  }
  0x19   :  { %479 = vmatprep.subr.bf16.mxu0 %v1145_v22  ;;  %v1149_v26 = vld [vmem:[%s1673_s5 + $0x50] ss:$8 sps:$4 sm:$0xff]   ;;  %v1154_v27 = vld [vmem:[%s1673_s5 + $0x44] ss:$8 sps:$4 sm:$0xff]   ;;  %v1152_v28 = vld [vmem:[%s1673_s5 + $0x40] ss:$8 sps:$4 sm:$0xff]  }
  0x1a   :  { %480 = vmatpush1.bf16.msra.mxu0 %v1143_v21  ;;  %v1157_v29 = vld [vmem:[%s1673_s5 + $0x34] ss:$8 sps:$4 sm:$0xff]   ;;  %v1155_v30 = vld [vmem:[%s1673_s5 + $0x30] ss:$8 sps:$4 sm:$0xff]   ;;  %v1160_v31 = vld [vmem:[%s1673_s5 + $0x24] ss:$8 sps:$4 sm:$0xff]  }
  0x1b   :  { %239 = vmatpush1.bf16.msra.mxu1 %v1139_v17  ;;  %481 = vmatprep.subr.bf16.mxu0 %v1148_v23  ;;  %v1158_v32 = vld [vmem:[%s1673_s5 + $0x20] ss:$8 sps:$4 sm:$0xff]   ;;  %v1163_v33 = vld [vmem:[%s1673_s5 + $0x14] ss:$8 sps:$4 sm:$0xff]   ;;  %v1161_v34 = vld [vmem:[%s1673_s5 + $0x10] ss:$8 sps:$4 sm:$0xff]  }
  0x1c   :  { %240 = vmatprep.subr.bf16.mxu1 %v1140_v18  ;;  %v1166_v35 = vld [vmem:[%s1673_s5 + $0x4] ss:$8 sps:$4 sm:$0xff]   ;;  %v1164_v36 = vld [vmem:[%s1673_s5] ss:$8 sps:$4 sm:$0xff]   ;;  %v1169_v37 = vld [vmem:[%s1673_s5 + $0xf4] ss:$8 sps:$4 sm:$0xff]  }
  0x1d   :  { %v1167_v38 = vld [vmem:[%s1673_s5 + $0xf0] ss:$8 sps:$4 sm:$0xff]   ;;  %v1172_v39 = vld [vmem:[%s1673_s5 + $0xe4] ss:$8 sps:$4 sm:$0xff]   ;;  %v1170_v40 = vld [vmem:[%s1673_s5 + $0xe0] ss:$8 sps:$4 sm:$0xff]  }
  0x1e   :  { %482 = vmatpush1.bf16.msra.mxu0 %v1146_v24  ;;  %v1175_v41 = vld [vmem:[%s1673_s5 + $0xd4] ss:$8 sps:$4 sm:$0xff]   ;;  %v1173_v42 = vld [vmem:[%s1673_s5 + $0xd0] ss:$8 sps:$4 sm:$0xff]   ;;  %v1178_v43 = vld [vmem:[%s1673_s5 + $0xc4] ss:$8 sps:$4 sm:$0xff]  }
  0x1f   :  { %241 = vmatpush1.bf16.msra.mxu1 %v1142_v19  ;;  %483 = vmatprep.subr.bf16.mxu0 %v1151_v25  ;;  %v1176_v44 = vld [vmem:[%s1673_s5 + $0xc0] ss:$8 sps:$4 sm:$0xff]   ;;  %v1181_v45 = vld [vmem:[%s1673_s5 + $0xb4] ss:$8 sps:$4 sm:$0xff]   ;;  %v1179_v46 = vld [vmem:[%s1673_s5 + $0xb0] ss:$8 sps:$4 sm:$0xff]   ;;  %v136_v25 = vlaneseq }
  0x20   :  { %v975_v47 = vld [vmem:[%s1670_s2] ss:$0 sm:$0xff]  ;;  %v1184_v57 = vld [vmem:[%s1673_s5 + $0xa4] ss:$8 sps:$4 sm:$0xff]   ;;  %v1187_v59 = vld [vmem:[%s1673_s5 + $0x94] ss:$8 sps:$4 sm:$0xff]  }
  0x21   :  { %v1182_v58 = vld [vmem:[%s1673_s5 + $0xa0] ss:$8 sps:$4 sm:$0xff]   ;;  %v1185_v60 = vld [vmem:[%s1673_s5 + $0x90] ss:$8 sps:$4 sm:$0xff]   ;;  %v1190_v61 = vld [vmem:[%s1673_s5 + $0x84] ss:$8 sps:$4 sm:$0xff]  }
  0x22   :  { %484 = vmatpush1.bf16.msra.mxu0 %v1149_v26  ;;  %v1188_v62 = vld [vmem:[%s1673_s5 + $0x80] ss:$8 sps:$4 sm:$0xff]   ;;  %v1191_v63 = vld [vmem:[%s1675_s7 + $0x70] ss:$8 sps:$4 sm:$0xff]   ;;  %v1193_v0 = vld [vmem:[%s1675_s7 + $0x74] ss:$8 sps:$4 sm:$0xff]  }
  0x23   :  { %485 = vmatprep.subr.bf16.mxu0 %v1154_v27  ;;  %v1196_v1 = vld [vmem:[%s1675_s7 + $0x64] ss:$8 sps:$4 sm:$0xff]   ;;  %732 = vmatprep.subr.bf16.mxu1 %v1193_v0  ;;  %v1194_v2 = vld [vmem:[%s1675_s7 + $0x60] ss:$8 sps:$4 sm:$0xff]   ;;  %v1199_v3 = vld [vmem:[%s1675_s7 + $0x54] ss:$8 sps:$4 sm:$0xff]  }
  0x24   :  { %v1197_v4 = vld [vmem:[%s1675_s7 + $0x50] ss:$8 sps:$4 sm:$0xff]   ;;  %v1202_v5 = vld [vmem:[%s1675_s7 + $0x44] ss:$8 sps:$4 sm:$0xff]   ;;  %v1200_v6 = vld [vmem:[%s1675_s7 + $0x40] ss:$8 sps:$4 sm:$0xff]  }
  0x25   :  { %v1205_v7 = vld [vmem:[%s1675_s7 + $0x34] ss:$8 sps:$4 sm:$0xff]   ;;  %v1203_v8 = vld [vmem:[%s1675_s7 + $0x30] ss:$8 sps:$4 sm:$0xff]   ;;  %v1208_v9 = vld [vmem:[%s1675_s7 + $0x24] ss:$8 sps:$4 sm:$0xff]  }
  0x26   :  { %486 = vmatpush1.bf16.msra.mxu0 %v1152_v28  ;;  %v1206_v10 = vld [vmem:[%s1675_s7 + $0x20] ss:$8 sps:$4 sm:$0xff]   ;;  %v1211_v11 = vld [vmem:[%s1675_s7 + $0x14] ss:$8 sps:$4 sm:$0xff]   ;;  %v1209_v12 = vld [vmem:[%s1675_s7 + $0x10] ss:$8 sps:$4 sm:$0xff]  }
  0x27   :  { %487 = vmatprep.subr.bf16.mxu0 %v1157_v29  ;;  %v1214_v13 = vld [vmem:[%s1675_s7 + $0x4] ss:$8 sps:$4 sm:$0xff]   ;;  %v1212_v14 = vld [vmem:[%s1675_s7] ss:$8 sps:$4 sm:$0xff]   ;;  %v1217_v15 = vld [vmem:[%s1675_s7 + $0xf4] ss:$8 sps:$4 sm:$0xff]  }
  0x28   :  { %v1215_v16 = vld [vmem:[%s1675_s7 + $0xf0] ss:$8 sps:$4 sm:$0xff]   ;;  %v1220_v17 = vld [vmem:[%s1675_s7 + $0xe4] ss:$8 sps:$4 sm:$0xff]   ;;  %v1218_v18 = vld [vmem:[%s1675_s7 + $0xe0] ss:$8 sps:$4 sm:$0xff]  }
  0x29   :  { %v1223_v19 = vld [vmem:[%s1675_s7 + $0xd4] ss:$8 sps:$4 sm:$0xff]   ;;  %v1221_v20 = vld [vmem:[%s1675_s7 + $0xd0] ss:$8 sps:$4 sm:$0xff]   ;;  %v1226_v21 = vld [vmem:[%s1675_s7 + $0xc4] ss:$8 sps:$4 sm:$0xff]  }
  0x2a   :  { %488 = vmatpush1.bf16.msra.mxu0 %v1155_v30  ;;  %v1224_v22 = vld [vmem:[%s1675_s7 + $0xc0] ss:$8 sps:$4 sm:$0xff]   ;;  %v1229_v23 = vld [vmem:[%s1675_s7 + $0xb4] ss:$8 sps:$4 sm:$0xff]   ;;  %v1227_v24 = vld [vmem:[%s1675_s7 + $0xb0] ss:$8 sps:$4 sm:$0xff]  }
  0x2b   :  { %489 = vmatprep.subr.bf16.mxu0 %v1160_v31  ;;  %v137_v26 = vshrl.u32 %v136_v25, 7  ;;  %v134_v29 = vld [vmem:[%s1672_s4] sm:$0x3]  ;;  %s964_s14 = sshll.u32 %s1280_s13, 4  ;;  %s965_s14 = int_to_ptr.vmem [resolvable:$true] %s964_s14 }
  0x2c   :  { %s1255_s15 = scalar_lea.vmem %s965_s14, 256  ;;  %p1260_p1 = scmp.lt.s32.totalorder %s965_s14, %s965_s14 }
  0x2d   :  { %v1577_v27 = vsub.s32 1, %v137_v26  ;;  %v1579_v28 = vsub.s32 0, %v137_v26  ;;  %p1256_p0 = scmp.ne.s32.totalorder %s965_s14, %s1255_s15  ;;  %p1261_p2 = scmp.lt.s32.totalorder %s1255_s15, %s1255_s15 }
  0x2e   :  { %490 = vmatpush1.bf16.msra.mxu0 %v1158_v32 }
  0x2f   :  { %491 = vmatprep.subr.bf16.mxu0 %v1163_v33  ;;  %v143_v31 = vrot.slane %v134_v29, %v1577_v27  ;;  %v139_v32 = vrot.slane %v134_v29, %v1579_v28  ;;  %p1262_p3 = por %p1261_p2, %p1260_p1 }
  0x31   :  { %p1263_p4 = pnand %p1262_p3, %p1256_p0 }
  0x32   :  { %492 = vmatpush1.bf16.msra.mxu0 %v1161_v34 }
  0x33   :  { %493 = vmatprep.subr.bf16.mxu0 %v1166_v35 }
  0x36   :  { %494 = vmatpush1.bf16.msra.mxu0 %v1164_v36 }
  0x37   :  { %495 = vmatprep.subr.bf16.mxu0 %v1169_v37 }
  0x3a   :  { %496 = vmatpush2.bf16.msra.mxu0 %v1167_v38 }
  0x3b   :  { %497 = vmatprep.subr.bf16.mxu0 %v1172_v39 }
  0x3e   :  { %498 = vmatpush2.bf16.msra.mxu0 %v1170_v40 }
  0x3f   :  { %499 = vmatprep.subr.bf16.mxu0 %v1175_v41 }
  0x42   :  { %500 = vmatpush2.bf16.msra.mxu0 %v1173_v42 }
  0x43   :  { %501 = vmatprep.subr.bf16.mxu0 %v1178_v43 }
  0x46   :  { %502 = vmatpush2.bf16.msra.mxu0 %v1176_v44 }
  0x47   :  { %503 = vmatprep.subr.bf16.mxu0 %v1181_v45 }
  0x4a   :  { %504 = vmatpush2.bf16.msra.mxu0 %v1179_v46  ;;  %v1232_v46 = vld [vmem:[%s1675_s7 + $0xa4] ss:$8 sps:$4 sm:$0xff]  }
  0x4b   :  { %505 = vmatprep.subr.bf16.mxu0 %v1184_v57  ;;  %v1244_v57 = vld [vmem:[%s1677_s9 + $0x28] sm:$0xff]  }
  0x4e   :  { %506 = vmatpush2.bf16.msra.mxu0 %v1182_v58  ;;  %v1245_v58 = vld [vmem:[%s1677_s9 + $0x60] sm:$0xff]  }
  0x4f   :  { %507 = vmatprep.subr.bf16.mxu0 %v1187_v59  ;;  %v1246_v59 = vld [vmem:[%s1677_s9 + $0x20] sm:$0xff]  }
  0x52   :  { %508 = vmatpush2.bf16.msra.mxu0 %v1185_v60  ;;  %v1247_v60 = vld [vmem:[%s1677_s9 + $0x58] sm:$0xff]  }
  0x53   :  { %509 = vmatprep.subr.bf16.mxu0 %v1190_v61  ;;  %v1248_v61 = vld [vmem:[%s1677_s9 + $0x18] sm:$0xff]  }
  0x56   :  { %510 = vmatpush2.bf16.msra.mxu0 %v1188_v62  ;;  %v307_v62 = vld [vmem:[%s1674_s6] sm:$0x3] }
  0x57   :  { %v316_v0 = vrot.slane %v307_v62, %v1577_v27 }
  0xc9   :  { %v108_v48 = vpop.f32.mrf.mxu0 }
  0xca   :  { %v109_v50 = vadd.f32 %v975_v47, %v108_v48  ;;  %v1235_v48 = vld [vmem:[%s1675_s7 + $0x94] ss:$8 sps:$4 sm:$0xff]  }
  0xcb   :  { %v1108_v49 = vpop.f32.mrf.mxu0 }
  0xcc   :  { %v115_v54 = vmax.f32 %v109_v50, 0.0  ;;  %v1233_v49 = vld [vmem:[%s1675_s7 + $0x90] ss:$8 sps:$4 sm:$0xff]   ;;  %v1238_v50 = vld [vmem:[%s1675_s7 + $0x84] ss:$8 sps:$4 sm:$0xff]  }
  0xcd   :  { %v111_v51 = vpop.f32.mrf.mxu0 }
  0xce   :  { %v112_v52 = vadd.f32 %v975_v47, %v111_v51  ;;  %v1230_v47 = vld [vmem:[%s1675_s7 + $0xa0] ss:$8 sps:$4 sm:$0xff]  }
  0xcf   :  { %v1109_v53 = vpop.f32.mrf.mxu0  ;;  %v1236_v51 = vld [vmem:[%s1675_s7 + $0x80] ss:$8 sps:$4 sm:$0xff]  }
  0xd0   :  { %v116_v55 = vmax.f32 %v112_v52, 0.0  ;;  %v1239_v52 = vld [vmem:[%s1677_s9 + $0x78] sm:$0xff]  }
  0xd1   :  { %v1240_v53 = vld [vmem:[%s1677_s9 + $0x38] sm:$0xff]   ;;  %1080 = vmatprep.subr.bf16.mxu0 %v1239_v52 }
  0xd2   :  { %v117_v56 = vpack.c.bf16 %v116_v55, %v115_v54  ;;  %v1241_v54 = vld [vmem:[%s1677_s9 + $0x70] sm:$0xff]  }
  0xd3   :  { %v1242_v55 = vld [vmem:[%s1677_s9 + $0x30] sm:$0xff]  }
  0xd4   :  { %259 = vmatmul.mubr.bf16.vlgmr.msra.gmra.mxu1 %v117_v56  ;;  %v1243_v56 = vld [vmem:[%s1677_s9 + $0x68] sm:$0xff]  }
  0xd5   :  { %733 = vmatpush1.bf16.msra.mxu1 %v1191_v63 }
  0xd6   :  { %734 = vmatprep.subr.bf16.mxu1 %v1196_v1  ;;  %v312_v1 = vrot.slane %v307_v62, %v1579_v28 }
  0xd9   :  { %735 = vmatpush1.bf16.msra.mxu1 %v1194_v2 }
  0xda   :  { %736 = vmatprep.subr.bf16.mxu1 %v1199_v3 }
  0xdd   :  { %737 = vmatpush1.bf16.msra.mxu1 %v1197_v4 }
  0xde   :  { %738 = vmatprep.subr.bf16.mxu1 %v1202_v5 }
  0xe1   :  { %739 = vmatpush1.bf16.msra.mxu1 %v1200_v6 }
  0xe2   :  { %740 = vmatprep.subr.bf16.mxu1 %v1205_v7 }
  0xe5   :  { %741 = vmatpush1.bf16.msra.mxu1 %v1203_v8 }
  0xe6   :  { %742 = vmatprep.subr.bf16.mxu1 %v1208_v9 }
  0xe9   :  { %743 = vmatpush1.bf16.msra.mxu1 %v1206_v10 }
  0xea   :  { %744 = vmatprep.subr.bf16.mxu1 %v1211_v11 }
  0xed   :  { %745 = vmatpush1.bf16.msra.mxu1 %v1209_v12 }
  0xee   :  { %746 = vmatprep.subr.bf16.mxu1 %v1214_v13 }
  0xf1   :  { %747 = vmatpush1.bf16.msra.mxu1 %v1212_v14 }
  0xf2   :  { %748 = vmatprep.subr.bf16.mxu1 %v1217_v15  ;;  %v1249_v15 = vld [vmem:[%s1677_s9 + $0x50] sm:$0xff]  }
  0xf5   :  { %749 = vmatpush2.bf16.msra.mxu1 %v1215_v16  ;;  %v1250_v16 = vld [vmem:[%s1677_s9 + $0x10] sm:$0xff]  }
  0xf6   :  { %750 = vmatprep.subr.bf16.mxu1 %v1220_v17  ;;  %v1251_v17 = vld [vmem:[%s1677_s9 + $0x48] sm:$0xff]  }
  0xf9   :  { %751 = vmatpush2.bf16.msra.mxu1 %v1218_v18  ;;  %v1252_v18 = vld [vmem:[%s1677_s9 + $0x8] sm:$0xff]  }
  0xfa   :  { %752 = vmatprep.subr.bf16.mxu1 %v1223_v19  ;;  %v1253_v19 = vld [vmem:[%s1677_s9 + $0x40] sm:$0xff]  }
  0xfd   :  { %753 = vmatpush2.bf16.msra.mxu1 %v1221_v20  ;;  %v1254_v20 = vld [vmem:[%s1677_s9] sm:$0xff]  }
  0xfe   :  { %754 = vmatprep.subr.bf16.mxu1 %v1226_v21  ;;  %v560_v21 = vld [vmem:[%s1676_s8] sm:$0x3] }
 0x101   :  { %755 = vmatpush2.bf16.msra.mxu1 %v1224_v22 }
 0x102   :  { %756 = vmatprep.subr.bf16.mxu1 %v1229_v23  ;;  %v569_v23 = vrot.slane %v560_v21, %v1577_v27  ;;  %v1060_v27 = vld [vmem:[%s1678_s10] ss:$0 sm:$0xff] }
 0x105   :  { %757 = vmatpush2.bf16.msra.mxu1 %v1227_v24  ;;  %v565_v24 = vrot.slane %v560_v21, %v1579_v28 }
 0x106   :  { %758 = vmatprep.subr.bf16.mxu1 %v1232_v46 }
 0x109   :  { %759 = vmatpush2.bf16.msra.mxu1 %v1230_v47 }
 0x10a   :  { %760 = vmatprep.subr.bf16.mxu1 %v1235_v48 }
 0x10d   :  { %761 = vmatpush2.bf16.msra.mxu1 %v1233_v49 }
 0x10e   :  { %762 = vmatprep.subr.bf16.mxu1 %v1238_v50 }
 0x111   :  { %763 = vmatpush2.bf16.msra.mxu1 %v1236_v51 }
 0x194   :  { %v260_v30 = vpop.f32.mrf.mxu1 }
 0x195   :  { %v261_v37 = vadd.f32 %v260_v30, %v139_v32 }
 0x196   :  { %v262_v33 = vpop.f32.mrf.mxu1 }
 0x197   :  { %v263_v35 = vadd.f32 %v262_v33, %v143_v31  ;;  %v269_v43 = vmax.f32 %v261_v37, 0.0 }
 0x198   :  { %v264_v34 = vpop.f32.mrf.mxu1 }
 0x199   :  { %v265_v36 = vadd.f32 %v264_v34, %v139_v32  ;;  %v270_v41 = vmax.f32 %v263_v35, 0.0 }
 0x19a   :  { %v266_v38 = vpop.f32.mrf.mxu1 }
 0x19b   :  { %v267_v39 = vadd.f32 %v266_v38, %v143_v31  ;;  %v271_v40 = vmax.f32 %v265_v36, 0.0 }
 0x19d   :  { %v272_v42 = vmax.f32 %v267_v39, 0.0  ;;  %v273_v45 = vpack.c.bf16 %v271_v40, %v269_v43 }
 0x19f   :  { %v274_v44 = vpack.c.bf16 %v272_v42, %v270_v41 }
 0x1a1   :  { %511 = vmatprep.mubr.bf16.mxu0 %v274_v44 }
 0x1a2   :  { %512 = vmatmul.mubr.bf16.vlgmr.msra.gmra.mxu0 %v273_v45 }
 0x1a3   :  { %1081 = vmatpush3.bf16.msra.mxu0 %v1240_v53 }
 0x1a4   :  { %1082 = vmatprep.subr.bf16.mxu0 %v1241_v54 }
 0x1a7   :  { %1083 = vmatpush3.bf16.msra.mxu0 %v1242_v55 }
 0x1a8   :  { %1084 = vmatprep.subr.bf16.mxu0 %v1243_v56 }
 0x1ab   :  { %1085 = vmatpush3.bf16.msra.mxu0 %v1244_v57 }
 0x1ac   :  { %1086 = vmatprep.subr.bf16.mxu0 %v1245_v58 }
 0x1af   :  { %1087 = vmatpush3.bf16.msra.mxu0 %v1246_v59 }
 0x1b0   :  { %1088 = vmatprep.subr.bf16.mxu0 %v1247_v60 }
 0x1b3   :  { %1089 = vmatpush3.bf16.msra.mxu0 %v1248_v61 }
 0x1b4   :  { %1090 = vmatprep.subr.bf16.mxu0 %v1249_v15 }
 0x1b7   :  { %1091 = vmatpush3.bf16.msra.mxu0 %v1250_v16 }
 0x1b8   :  { %1092 = vmatprep.subr.bf16.mxu0 %v1251_v17 }
 0x1bb   :  { %1093 = vmatpush3.bf16.msra.mxu0 %v1252_v18 }
 0x1bc   :  { %1094 = vmatprep.subr.bf16.mxu0 %v1253_v19 }
 0x1bf   :  { %1095 = vmatpush3.bf16.msra.mxu0 %v1254_v20 }
 0x262   :  { %v513_v63 = vpop.f32.mrf.mxu0 }
 0x263   :  { %v514_v6 = vadd.f32 %v513_v63, %v312_v1 }
 0x264   :  { %v515_v2 = vpop.f32.mrf.mxu0 }
 0x265   :  { %v516_v4 = vadd.f32 %v515_v2, %v316_v0  ;;  %v522_v12 = vmax.f32 %v514_v6, 0.0 }
 0x266   :  { %v517_v3 = vpop.f32.mrf.mxu0 }
 0x267   :  { %v518_v5 = vadd.f32 %v517_v3, %v312_v1  ;;  %v523_v10 = vmax.f32 %v516_v4, 0.0 }
 0x268   :  { %v519_v7 = vpop.f32.mrf.mxu0 }
 0x269   :  { %v520_v8 = vadd.f32 %v519_v7, %v316_v0  ;;  %v524_v9 = vmax.f32 %v518_v5, 0.0 }
 0x26b   :  { %v525_v11 = vmax.f32 %v520_v8, 0.0  ;;  %v526_v14 = vpack.c.bf16 %v524_v9, %v522_v12 }
 0x26d   :  { %v527_v13 = vpack.c.bf16 %v525_v11, %v523_v10 }
 0x26f   :  { %764 = vmatprep.mubr.bf16.mxu1 %v527_v13 }
 0x270   :  { %765 = vmatmul.mubr.bf16.vlgmr.msra.gmra.mxu1 %v526_v14 }
 0x330   :  { %v766_v22 = vpop.f32.mrf.mxu1 }
 0x331   :  { %v767_v31 = vadd.f32 %v766_v22, %v565_v24 }
 0x332   :  { %v768_v25 = vpop.f32.mrf.mxu1 }
 0x333   :  { %v769_v29 = vadd.f32 %v768_v25, %v569_v23  ;;  %v775_v37 = vmax.f32 %v767_v31, 0.0 }
 0x334   :  { %v770_v26 = vpop.f32.mrf.mxu1 }
 0x335   :  { %v771_v30 = vadd.f32 %v770_v26, %v565_v24  ;;  %v776_v35 = vmax.f32 %v769_v29, 0.0 }
 0x336   :  { %v772_v32 = vpop.f32.mrf.mxu1 }
 0x337   :  { %v773_v33 = vadd.f32 %v772_v32, %v569_v23  ;;  %v777_v34 = vmax.f32 %v771_v30, 0.0 }
 0x339   :  { %v778_v36 = vmax.f32 %v773_v33, 0.0  ;;  %v779_v39 = vpack.c.bf16 %v777_v34, %v775_v37 }
 0x33b   :  { %v780_v38 = vpack.c.bf16 %v778_v36, %v776_v35 }
 0x33d   :  { %948 = vmatprep.mubr.bf16.mxu0 %v780_v38 }
 0x33e   :  { %949 = vmatmul.mubr.bf16.vlgmr.msra.gmra.mxu0 %v779_v39 }
 0x3fe   :  { %v1096_v40 = vpop.f32.mrf.mxu0 }
 0x400   :  { %v1097_v28 = vpop.f32.mrf.mxu0 }
 0x401   :  { %v1098_v41 = vadd.f32 %v1097_v28, %v1096_v40 }
 0x402   :  { %v1099_v42 = vpop.f32.mrf.mxu0 }
 0x403   :  { %v951_v43 = vadd.f32 %v1098_v41, %v1060_v27 }
 0x404   :  { %v1100_v44 = vpop.f32.mrf.mxu0 }
 0x405   :  { %957 = vst [vmem:[#allocation2] sm:$0xff] %v951_v43  ;;  %v1101_v45 = vadd.f32 %v1100_v44, %v1099_v42 }
 0x407   :  { %v954_v46 = vadd.f32 %v1101_v45, %v1060_v27 }
 0x409   :  { %958 = vst [vmem:[#allocation2 + $0x8] sm:$0xff] %v954_v46 }
 0x40a   :  { %1266 = shalt.err (!%p1263_p4)
}
 0x40b   :  { %s1281_s10 = smov 128   ;;  %s1282_s16 = smov 8  }
 0x40c   :  { %970 = dma.vmem_to_hbm [thread:$0]  %s965_s14, 256, %s1679_s11, [#allocation3], %s1281_s10, %s1281_s10, %s1282_s16  }
 0x40d   :  { %1275 = dma.done.wait [#allocation3], 256  }
 0x40e   :  { %1276 = vsyncadd [#allocation3], 4294967040 }
 0x40f   :  { %974 = vsyncpa [#allocation3], 1 }

</bundles_post_ra>
